<compile_context>
chip_gen: v6e
topology: v6e:2x2x1
jax: 0.10.0
libtpu: 0.0.40
codegen_flags: <defaults>
</compile_context>

<pallas_src>
import jax
import jax.numpy as jnp
from jax.experimental import pallas as pl
from jax.experimental.pallas import tpu as pltpu


def _mask_kernel(w_ref, x_ref, o_ref):
    # Upcast to f32 for the sigmoid (EUP) and multiply (VPU); cast on store.
    w = w_ref[...].astype(jnp.float32)
    x = x_ref[...].astype(jnp.float32)
    o_ref[...] = (jax.nn.sigmoid(w) * x).astype(o_ref.dtype)


def mask_forward(weight: jax.Array, x: jax.Array, *, target_block_bytes: int = 2 << 20) -> jax.Array:
    """out = sigmoid(weight) * x, elementwise (weight.shape == x.shape)."""
    assert weight.shape == x.shape, "Mask weight must match input shape"
    assert weight.dtype == x.dtype, "weight and x must share a dtype"

    orig_shape = x.shape
    n = x.size
    itemsize = jnp.dtype(x.dtype).itemsize
    # Minimum sublane tile per dtype width (f32:8, bf16:16, int8/fp8:32).
    sub_min = {4: 8, 2: 16, 1: 32}.get(itemsize, 8)

    # Widest lane-dense slab width (multiple of 128) that divides the element count.
    lane = None
    for cand in (1024, 512, 256, 128):
        if n % cand == 0:
            lane = cand
            break

    w_flat = weight.reshape(-1)
    x_flat = x.reshape(-1)
    n_eff = n
    if lane is None:
        # Irregular size: pad the flat arrays once to a multiple of 128.
        lane = 128
        n_eff = pl.cdiv(n, lane) * lane
        pad = n_eff - n
        w_flat = jnp.pad(w_flat, (0, pad))
        x_flat = jnp.pad(x_flat, (0, pad))

    rows = n_eff // lane
    w2 = w_flat.reshape(rows, lane)
    x2 = x_flat.reshape(rows, lane)

    # ~2 MiB per operand per block; clamp for small inputs.
    target_rows = max(sub_min, target_block_bytes // (lane * itemsize))
    if rows <= target_rows:
        block_rows = rows  # full-extent block dim is always legal
    else:
        block_rows = (target_rows // sub_min) * sub_min
    grid = (pl.cdiv(rows, block_rows),)

    spec = pl.BlockSpec((block_rows, lane), lambda i: (i, 0))

    out2 = pl.pallas_call(
        _mask_kernel,
        out_shape=jax.ShapeDtypeStruct((rows, lane), x.dtype),
        grid_spec=pltpu.PrefetchScalarGridSpec(
            num_scalar_prefetch=0,
            grid=grid,
            in_specs=[spec, spec],
            out_specs=spec,
        ),
        compiler_params=pltpu.CompilerParams(
            dimension_semantics=("parallel",),   # lets v7x shard blocks across both TCs
            vmem_limit_bytes=48 << 20,           # headroom for 3 streams x 2 buffers x 2 MiB
        ),
    )(w2, x2)

    out_flat = out2.reshape(-1)
    if n_eff != n:
        out_flat = out_flat[:n]
    return out_flat.reshape(orig_shape)


def _reference(weight, x):
    return (jax.nn.sigmoid(weight.astype(jnp.float32)) * x.astype(jnp.float32)).astype(x.dtype)


if __name__ == "__main__":
    key = jax.random.PRNGKey(0)

    # ---- Primary case: small NCHW shape consistent with the module ----
    N, C, H, W = 2, 4, 16, 16
    size = (N, C, H, W)
    k_w, k_x, key = jax.random.split(key, 3)
    # Deterministic init matching torch's weight.data.uniform_(-1, 1)
    weight = jax.random.uniform(k_w, size, dtype=jnp.float32, minval=-1.0, maxval=1.0)
    x = jax.random.normal(k_x, size, dtype=jnp.float32)

    out = jax.block_until_ready(mask_forward(weight, x))
    assert out.shape == x.shape
    assert jnp.allclose(out, _reference(weight, x), atol=1e-6, rtol=1e-6)

    # ---- Multi-block path (grid > 1, ragged last block) ----
    size2 = (4, 64, 56, 56)  # 802816 elems -> (784, 1024) slab, block (512, 1024)
    k_w, k_x, key = jax.random.split(key, 3)
    w2 = jax.random.uniform(k_w, size2, dtype=jnp.float32, minval=-1.0, maxval=1.0)
    x2 = jax.random.normal(k_x, size2, dtype=jnp.float32)
    out2 = jax.block_until_ready(mask_forward(w2, x2))
    assert jnp.allclose(out2, _reference(w2, x2), atol=1e-6, rtol=1e-6)

    # ---- Irregular size (not a multiple of 128) exercises the pad path ----
    size3 = (1, 3, 7, 11)
    k_w, k_x, key = jax.random.split(key, 3)
    w3 = jax.random.uniform(k_w, size3, dtype=jnp.float32, minval=-1.0, maxval=1.0)
    x3 = jax.random.normal(k_x, size3, dtype=jnp.float32)
    out3 = jax.block_until_ready(mask_forward(w3, x3))
    assert jnp.allclose(out3, _reference(w3, x3), atol=1e-6, rtol=1e-6)

    # ---- bf16 storage path (compute stays f32 in-kernel) ----
    k_w, k_x, key = jax.random.split(key, 3)
    w4 = jax.random.uniform(k_w, size, dtype=jnp.float32, minval=-1.0, maxval=1.0).astype(jnp.bfloat16)
    x4 = jax.random.normal(k_x, size, dtype=jnp.float32).astype(jnp.bfloat16)
    out4 = jax.block_until_ready(mask_forward(w4, x4))
    ref4 = _reference(w4, x4)
    assert jnp.allclose(out4.astype(jnp.float32), ref4.astype(jnp.float32), atol=1e-2, rtol=1e-2)

    print("KERNEL_OK")
</pallas_src>

<mosaic_0001>
module attributes {stable_mosaic.version = 11 : i64} {
  func.func @_mask_kernel(%arg0: i32, %arg1: memref<2x1024xf32, #tpu.memory_space<vmem>>, %arg2: memref<2x1024xf32, #tpu.memory_space<vmem>>, %arg3: memref<2x1024xf32, #tpu.memory_space<vmem>>) attributes {dimension_semantics = [#tpu.dimension_semantics<parallel>], iteration_bounds = array<i64: 1>, scalar_prefetch = 0 : i64, scratch_operands = 0 : i64, tpu.core_type = #tpu.core_type<tc>, window_params = [{transform_indices = @transform_0, window_bounds = array<i64: 2, 1024>}, {transform_indices = @transform_1, window_bounds = array<i64: 2, 1024>}, {transform_indices = @transform_2, window_bounds = array<i64: 2, 1024>}]} {
    %c0 = arith.constant 0 : index
    %c0_0 = arith.constant 0 : index
    %0 = vector.load %arg1[%c0, %c0_0] : memref<2x1024xf32, #tpu.memory_space<vmem>>, vector<2x1024xf32>
    %c0_1 = arith.constant 0 : index
    %c0_2 = arith.constant 0 : index
    %1 = vector.load %arg2[%c0_1, %c0_2] : memref<2x1024xf32, #tpu.memory_space<vmem>>, vector<2x1024xf32>
    %2 = arith.negf %0 : vector<2x1024xf32>
    %3 = math.exp %2 : vector<2x1024xf32>
    %cst = arith.constant 1.000000e+00 : f32
    %4 = vector.broadcast %cst : f32 to vector<2x1024xf32>
    %5 = arith.addf %4, %3 : vector<2x1024xf32>
    %6 = arith.divf %4, %5 : vector<2x1024xf32>
    %7 = arith.mulf %6, %1 : vector<2x1024xf32>
    %c0_3 = arith.constant 0 : index
    %c0_4 = arith.constant 0 : index
    %8 = vector.load %arg3[%c0_3, %c0_4] : memref<2x1024xf32, #tpu.memory_space<vmem>>, vector<2x1024xf32>
    tpu.vector_store %arg3[%c0_3, %c0_4], %7 {strides = array<i32>} : memref<2x1024xf32, #tpu.memory_space<vmem>>, vector<2x1024xf32>,
    return
  }
  func.func @transform_0(%arg0: i32) -> (i32, i32) {
    %c0_i32 = arith.constant 0 : i32
    %c0_i32_0 = arith.constant 0 : i32
    return %arg0, %c0_i32 : i32, i32
  }
  func.func @transform_1(%arg0: i32) -> (i32, i32) {
    %c0_i32 = arith.constant 0 : i32
    %c0_i32_0 = arith.constant 0 : i32
    return %arg0, %c0_i32 : i32, i32
  }
  func.func @transform_2(%arg0: i32) -> (i32, i32) {
    %c0_i32 = arith.constant 0 : i32
    %c0_i32_0 = arith.constant 0 : i32
    return %arg0, %c0_i32 : i32, i32
  }
}

</mosaic_0001>

<bundles_post_ra>
// kernel: tpu_custom_call.1
= control target key start
LH: loop header
LB: loop body
LE: loop exit
PB: predicated region body
PF: predicated region fallthrough
CT: control target
= control target key end

     0   :  { %7 = vsyncpa [#allocation3], 0  ;;  %s178_s0 = inlined_call_operand.hbm [shape: f32[2,1024], index: 0, kind: input, shape index: {}]   ;;  %s179_s1 = inlined_call_operand.hbm [shape: f32[2,1024], index: 1, kind: input, shape index: {}]   ;;  %s180_s2 = inlined_call_operand.hbm [shape: f32[2,1024], index: 2, kind: output, shape index: {}]  }
   0x1   :  { %8 = vsyncpa [#allocation6], 0 }
   0x2   :  { %9 = vsyncpa [#allocation4], 0  ;;  %s151_s9 = smov [#allocation2]   ;;  %s152_s11 = smov [#allocation5]  }
   0x3   :  { %s16_s10 = sshll.u32 %s151_s9, 4  ;;  %s26_s12 = sshll.u32 %s152_s11, 4  ;;  %s17_s10 = int_to_ptr.vmem [resolvable:$true] %s16_s10  ;;  %s27_s12 = int_to_ptr.vmem [resolvable:$true] %s26_s12 }
   0x4   :  { %s93_s13 = scalar_lea.vmem %s17_s10, 256  ;;  %p98_p1 = scmp.lt.s32.totalorder %s17_s10, %s17_s10 }
   0x5   :  { %p94_p0 = scmp.ne.s32.totalorder %s17_s10, %s93_s13  ;;  %p99_p2 = scmp.lt.s32.totalorder %s93_s13, %s93_s13 }
   0x7   :  { %p100_p3 = por %p99_p2, %p98_p1 }
   0x9   :  { %p101_p4 = pnand %p100_p3, %p94_p0 }
   0xb   :  { %104 = shalt.err (!%p101_p4)
}
   0xc   :  { %19 = dma.hbm_to_vmem [thread:$0]  %s178_s0, 256, %s17_s10, [#allocation3]  }
   0xd   :  { %s113_s16 = scalar_lea.vmem %s27_s12, 256  ;;  %p118_p6 = scmp.lt.s32.totalorder %s27_s12, %s27_s12 }
   0xe   :  { %p114_p5 = scmp.ne.s32.totalorder %s27_s12, %s113_s16  ;;  %p119_p7 = scmp.lt.s32.totalorder %s113_s16, %s113_s16 }
  0x10   :  { %p120_p8 = por %p119_p7, %p118_p6 }
  0x12   :  { %p121_p9 = pnand %p120_p8, %p114_p5 }
  0x14   :  { %124 = shalt.err (!%p121_p9)
}
  0x15   :  { %29 = dma.hbm_to_vmem [thread:$0]  %s179_s1, 256, %s27_s12, [#allocation6]  }
  0x16   :  { %145 = dma.done.wait [#allocation3], 256  }
  0x17   :  { %146 = vsyncadd [#allocation3], 4294967040 }
  0x18   :  { %147 = dma.done.wait [#allocation6], 256  }
  0x19   :  { %148 = vsyncadd [#allocation6], 4294967040  ;;  %v36_v0 = vld [vmem:[#allocation2] sm:$0xff]  ;;  %v37_v1 = vld [vmem:[#allocation2 + $0x8] sm:$0xff]  ;;  %s153_s0 = smov [#allocation7]  }
  0x1a   :  { %v72_v2 = vmul.f32 -1.442695, %v36_v0  ;;  %v73_v3 = vmul.f32 -1.442695, %v37_v1  ;;  %v38_v8 = vld [vmem:[#allocation5] sm:$0xff]  ;;  %v39_v9 = vld [vmem:[#allocation5 + $0x8] sm:$0xff] }
  0x1b   :  { %s62_s1 = sshll.u32 %s153_s0, 4  ;;  %s63_s1 = int_to_ptr.vmem [resolvable:$true] %s62_s1 }
  0x1c   :  { %77 = vpow2.f32 %v72_v2  ;;  %s125_s19 = scalar_lea.vmem %s63_s1, 256  ;;  %p130_p11 = scmp.lt.s32.totalorder %s63_s1, %s63_s1 }
  0x1d   :  { %79 = vpow2.f32 %v73_v3  ;;  %p126_p10 = scmp.ne.s32.totalorder %s63_s1, %s125_s19  ;;  %p131_p12 = scmp.lt.s32.totalorder %s125_s19, %s125_s19 }
  0x1f   :  { %p132_p13 = por %p131_p12, %p130_p11 }
  0x21   :  { %p133_p0 = pnand %p132_p13, %p126_p10 }
  0x29   :  { %v78_v4 = vpop.eup %77 }
  0x2a   :  { %v80_v5 = vpop.eup %79  ;;  %v46_v6 = vadd.f32 1.0, %v78_v4 }
  0x2b   :  { %v47_v7 = vadd.f32 1.0, %v80_v5 }
  0x2c   :  { %81 = vrcp.f32 %v46_v6 }
  0x2d   :  { %83 = vrcp.f32 %v47_v7 }
  0x39   :  { %v82_v10 = vpop.eup %81 }
  0x3a   :  { %v84_v11 = vpop.eup %83  ;;  %v52_v12 = vmul.f32 %v82_v10, %v38_v8 }
  0x3b   :  { %v53_v13 = vmul.f32 %v84_v11, %v39_v9 }
  0x3c   :  { %54 = vst [vmem:[#allocation7] sm:$0xff] %v52_v12 }
  0x3d   :  { %55 = vst [vmem:[#allocation7 + $0x8] sm:$0xff] %v53_v13 }
  0x3e   :  { %136 = shalt.err (!%p133_p0)
}
  0x3f   :  { %65 = dma.vmem_to_hbm [thread:$0]  %s63_s1, 256, %s180_s2, [#allocation4]  }
  0x40   :  { %149 = dma.done.wait [#allocation4], 256  }
  0x41   :  { %150 = vsyncadd [#allocation4], 4294967040 }
  0x42   :  { %69 = vsyncpa [#allocation3], 1 }
  0x43   :  { %70 = vsyncpa [#allocation6], 1 }
  0x44   :  { %71 = vsyncpa [#allocation4], 1 }

</bundles_post_ra>
